<compile_context>
chip_gen: v7x
topology: tpu7x:2x2x1
jax: 0.10.0
libtpu: 0.0.40
codegen_flags: <defaults>
</compile_context>

<pallas_src>
import functools

import jax
import jax.numpy as jnp
from jax.experimental import pallas as pl
from jax.experimental.pallas import tpu as pltpu

_LANE = 128
_MIB = 1024 * 1024


def _round_up(v, m):
    return -(-v // m) * m


# ----------------------------------------------------------------------------
# Kernel
# ----------------------------------------------------------------------------
def _mlp_kernel(x_ref, w1_ref, b1_ref, w2_ref, b2_ref, w3_ref, b3_ref,
                w4_ref, b4_ref, o_ref):
    cdt = w1_ref.dtype  # matmul operand dtype (f32 or bf16); MXU accumulates f32

    # Layer 1: Linear + ReLU
    h = jnp.dot(x_ref[...], w1_ref[...], preferred_element_type=jnp.float32)
    h = jnp.maximum(h + b1_ref[...], 0.0).astype(cdt)
    # Layer 2: Linear + ReLU
    h = jnp.dot(h, w2_ref[...], preferred_element_type=jnp.float32)
    h = jnp.maximum(h + b2_ref[...], 0.0).astype(cdt)
    # Layer 3: Linear + ReLU
    h = jnp.dot(h, w3_ref[...], preferred_element_type=jnp.float32)
    h = jnp.maximum(h + b3_ref[...], 0.0).astype(cdt)
    # Output layer: Linear (no activation); lane-dense store (A padded to 128).
    out = jnp.dot(h, w4_ref[...], preferred_element_type=jnp.float32)
    o_ref[...] = (out + b4_ref[...]).astype(o_ref.dtype)


# ----------------------------------------------------------------------------
# Chip-aware tiling helpers
# ----------------------------------------------------------------------------
def _tpu_topology():
    """(vmem_capacity_bytes, tensorcores_per_chip) with conservative fallbacks."""
    vmem = None
    try:
        vmem = int(pltpu.get_tpu_info().vmem_capacity_bytes)
    except Exception:
        pass
    if not vmem:
        vmem = 64 * _MIB  # conservative default
    # v5e / v6e: 128 MiB VMEM, 1 TensorCore per chip.  v7x: 64 MiB per TC, 2 TCs.
    num_cores = 1 if vmem >= 100 * _MIB else 2
    return vmem, num_cores


def _pick_batch_tile(B, Dp, Hp, Ap, requested, itemsize, budget, num_cores,
                     row_align, weight_bufs):
    """Batch tile: sublane-aligned, split across TensorCores only when there
    are 2 of them, and bounded by a chip-appropriate VMEM budget."""
    requested = max(row_align, (int(requested) // row_align) * row_align)

    weight_bytes = ((Dp * Hp + 2 * Hp * Hp + Hp * Ap) * itemsize
                    + (3 * Hp + Ap) * 4) * weight_bufs

    def vmem_bytes(t):
        io = 2 * t * Dp * itemsize + 2 * t * Ap * 4   # double-buffered x / out tiles
        acts = 2 * t * Hp * 4                         # live f32 activation slabs
        return io + acts + weight_bytes

    if B <= requested:
        if num_cores >= 2 and B >= 2 * row_align:
            # >=2 grid steps so both TensorCores get near-equal, aligned work.
            tb = _round_up((B + 1) // 2, row_align)
        else:
            # Single-TC chip: one grid step, no pointless per-step overhead.
            tb = B
    else:
        tb = requested

    # TODO(synk): if hidden_dim ever grows so large that weights don't fit even
    # single-buffered (roughly H > ~1500 f32 on v7x), add a K-tiling grid axis
    # with an f32 VMEM accumulator instead of letting tb shrink below ~128 rows.
    while tb > row_align and vmem_bytes(tb) > budget:
        tb = max(row_align, ((tb // 2) // row_align) * row_align)
    return tb


def _const_spec(shape, single_buffer):
    """BlockSpec for a grid-invariant (resident) weight / bias block."""
    index_map = lambda i: (0, 0)
    if single_buffer:
        try:
            # Grid-invariant blocks are only DMA'd once; single-buffer them so
            # resident weights don't cost 2x VMEM (matters on v7x at large H).
            return pl.BlockSpec(shape, index_map, pipeline_mode=pl.Buffered(1))
        except Exception:
            pass
    return pl.BlockSpec(shape, index_map)


# ----------------------------------------------------------------------------
# Forward
# ----------------------------------------------------------------------------
@functools.partial(jax.jit, static_argnames=("num_actions", "batch_tile"))
def deep_cfr_forward(x, params, num_actions, batch_tile=256):
    """Fused forward pass of DeepCFRNetwork.

    x:           (B, input_dim)
    params:      lane-padded params from prepare_params()
    num_actions: original (unpadded) number of actions -- static
    returns      (B, num_actions) float32
    """
    w1, b1 = params["w1"], params["b1"]
    w2, b2 = params["w2"], params["b2"]
    w3, b3 = params["w3"], params["b3"]
    w4, b4 = params["w4"], params["b4"]

    B, D = x.shape
    Dp, Hp = w1.shape
    Ap = w4.shape[1]
    cdt = w1.dtype
    itemsize = jnp.dtype(cdt).itemsize

    # Cast + lane-pad x once in the wrapper (layout plumbing, not compute).
    if x.dtype != cdt:
        x = x.astype(cdt)
    if D != Dp:
        x = jnp.pad(x, ((0, 0), (0, Dp - D)))

    # Chip-aware VMEM budget.
    vmem_cap, num_cores = _tpu_topology()
    if vmem_cap >= 100 * _MIB:          # v5e / v6e: 128 MiB VMEM, single TC
        budget = 80 * _MIB
    else:                               # v7x: 64 MiB per TC, 2 TCs
        budget = 24 * _MIB
    vmem_limit = int(min(budget + 16 * _MIB, vmem_cap * 3 // 4))

    weight_bytes = ((Dp * Hp + 2 * Hp * Hp + Hp * Ap) * itemsize
                    + (3 * Hp + Ap) * 4)
    # Single-buffer the resident weights when double-buffering would eat a
    # significant chunk of the budget (always correct; saves VMEM at big H).
    single_buffer_weights = (2 * weight_bytes) > (budget // 2)
    weight_bufs = 1 if single_buffer_weights else 2

    row_align = 16 if itemsize < 4 else 8       # bf16 packs 16 rows / vreg
    tb = _pick_batch_tile(B, Dp, Hp, Ap, batch_tile, itemsize, budget,
                          num_cores, row_align, weight_bufs)
    grid = (pl.cdiv(B, tb),)

    cost = pl.CostEstimate(
        flops=int(2 * B * (Dp * Hp + 2 * Hp * Hp + Hp * Ap)),
        transcendentals=0,
        bytes_accessed=int(B * Dp * itemsize + weight_bytes + B * Ap * 4),
    )

    wspec = lambda shape: _const_spec(shape, single_buffer_weights)

    out = pl.pallas_call(
        _mlp_kernel,
        out_shape=jax.ShapeDtypeStruct((B, Ap), jnp.float32),
        grid=grid,
        in_specs=[
            pl.BlockSpec((tb, Dp), lambda i: (i, 0)),   # x batch tile
            wspec((Dp, Hp)), wspec((1, Hp)),            # layer 1
            wspec((Hp, Hp)), wspec((1, Hp)),            # layer 2
            wspec((Hp, Hp)), wspec((1, Hp)),            # layer 3
            wspec((Hp, Ap)), wspec((1, Ap)),            # output layer (lane-padded)
        ],
        out_specs=pl.BlockSpec((tb, Ap), lambda i: (i, 0)),
        compiler_params=pltpu.CompilerParams(
            dimension_semantics=("parallel",),
            vmem_limit_bytes=vmem_limit),
        cost_estimate=cost,
    )(x, w1, b1, w2, b2, w3, b3, w4, b4)

    # Lane-dense store in-kernel; slice back to the real action count here.
    return out[:, :num_actions]


# ----------------------------------------------------------------------------
# Parameter preparation (one-time, outside the per-step loop)
# ----------------------------------------------------------------------------
def prepare_params(torch_params, compute_dtype=jnp.float32):
    """PyTorch (out, in) weights -> (in, out), zero lane-padded to multiples of
    128 in every dim, in compute_dtype; biases -> (1, out_pad) float32."""
    cdt = jnp.dtype(compute_dtype)
    H, D = torch_params["w1"].shape
    A = torch_params["w4"].shape[0]
    Dp, Hp, Ap = _round_up(D, _LANE), _round_up(H, _LANE), _round_up(A, _LANE)

    def pad_w(name, rows, cols):
        wt = jnp.asarray(torch_params[name]).T.astype(cdt)   # (in, out)
        return jnp.zeros((rows, cols), cdt).at[:wt.shape[0], :wt.shape[1]].set(wt)

    def pad_b(name, cols):
        b = jnp.asarray(torch_params[name]).astype(jnp.float32).reshape(1, -1)
        return jnp.zeros((1, cols), jnp.float32).at[:, :b.shape[1]].set(b)

    return dict(
        w1=pad_w("w1", Dp, Hp), b1=pad_b("b1", Hp),
        w2=pad_w("w2", Hp, Hp), b2=pad_b("b2", Hp),
        w3=pad_w("w3", Hp, Hp), b3=pad_b("b3", Hp),
        w4=pad_w("w4", Hp, Ap), b4=pad_b("b4", Ap),
    )


def init_params(key, input_dim, hidden_dim, num_actions):
    """Deterministic synthetic init (PyTorch weight convention: (out, in))."""
    ks = jax.random.split(key, 8)

    def lin(kw, kb, out_f, in_f):
        bound = 1.0 / jnp.sqrt(in_f)
        w = jax.random.uniform(kw, (out_f, in_f), jnp.float32, -bound, bound)
        b = jax.random.uniform(kb, (out_f,), jnp.float32, -bound, bound)
        return w, b

    w1, b1 = lin(ks[0], ks[1], hidden_dim, input_dim)
    w2, b2 = lin(ks[2], ks[3], hidden_dim, hidden_dim)
    w3, b3 = lin(ks[4], ks[5], hidden_dim, hidden_dim)
    w4, b4 = lin(ks[6], ks[7], num_actions, hidden_dim)
    return dict(w1=w1, b1=b1, w2=w2, b2=b2, w3=w3, b3=b3, w4=w4, b4=b4)


def reference_forward(x, p):
    h = jnp.maximum(x @ p["w1"].T + p["b1"], 0.0)
    h = jnp.maximum(h @ p["w2"].T + p["b2"], 0.0)
    h = jnp.maximum(h @ p["w3"].T + p["b3"], 0.0)
    return h @ p["w4"].T + p["b4"]


if __name__ == "__main__":
    input_dim, hidden_dim, num_actions = 16, 32, 4

    key = jax.random.PRNGKey(0)
    k_params, k_x = jax.random.split(key)
    torch_params = init_params(k_params, input_dim, hidden_dim, num_actions)

    # --- f32 compute path ----------------------------------------------------
    params_f32 = prepare_params(torch_params, jnp.float32)

    B = 64
    x = jax.random.normal(k_x, (B, input_dim), dtype=jnp.float32)
    out = jax.block_until_ready(deep_cfr_forward(x, params_f32, num_actions))
    ref = reference_forward(x, torch_params)
    assert out.shape == (B, num_actions)
    assert jnp.allclose(out, ref, atol=1e-2, rtol=1e-2), "f32 mismatch vs reference"

    # Multi-step grid with a ragged last batch tile (B not divisible by tile).
    B2 = 50
    x2 = jax.random.normal(jax.random.PRNGKey(1), (B2, input_dim), dtype=jnp.float32)
    out2 = jax.block_until_ready(
        deep_cfr_forward(x2, params_f32, num_actions, batch_tile=16))
    ref2 = reference_forward(x2, torch_params)
    assert out2.shape == (B2, num_actions)
    assert jnp.allclose(out2, ref2, atol=1e-2, rtol=1e-2), "ragged-tile mismatch"

    # --- bf16 compute path (higher MXU throughput); looser tolerance ---------
    params_bf16 = prepare_params(torch_params, jnp.bfloat16)
    out_bf16 = jax.block_until_ready(deep_cfr_forward(x, params_bf16, num_actions))
    assert out_bf16.shape == (B, num_actions)
    assert jnp.allclose(out_bf16, ref, atol=1e-1, rtol=1e-1), "bf16 mismatch"

    print("KERNEL_OK")
</pallas_src>

<mosaic_0001>
module attributes {stable_mosaic.version = 11 : i64} {
  func.func @_mlp_kernel(%arg0: i32, %arg1: memref<32x128xf32, #tpu.memory_space<vmem>>, %arg2: memref<128x128xf32, #tpu.memory_space<vmem>>, %arg3: memref<1x128xf32, #tpu.memory_space<vmem>>, %arg4: memref<128x128xf32, #tpu.memory_space<vmem>>, %arg5: memref<1x128xf32, #tpu.memory_space<vmem>>, %arg6: memref<128x128xf32, #tpu.memory_space<vmem>>, %arg7: memref<1x128xf32, #tpu.memory_space<vmem>>, %arg8: memref<128x128xf32, #tpu.memory_space<vmem>>, %arg9: memref<1x128xf32, #tpu.memory_space<vmem>>, %arg10: memref<32x128xf32, #tpu.memory_space<vmem>>) attributes {dimension_semantics = [#tpu.dimension_semantics<parallel>], iteration_bounds = array<i64: 2>, scalar_prefetch = 0 : i64, scratch_operands = 0 : i64, tpu.core_type = #tpu.core_type<tc>, window_params = [{transform_indices = @transform_0, window_bounds = array<i64: 32, 128>}, {pipeline_mode = #tpu.pipeline_mode<synchronous>, transform_indices = @transform_1, window_bounds = array<i64: 128, 128>}, {pipeline_mode = #tpu.pipeline_mode<synchronous>, transform_indices = @transform_2, window_bounds = array<i64: 1, 128>}, {pipeline_mode = #tpu.pipeline_mode<synchronous>, transform_indices = @transform_3, window_bounds = array<i64: 128, 128>}, {pipeline_mode = #tpu.pipeline_mode<synchronous>, transform_indices = @transform_4, window_bounds = array<i64: 1, 128>}, {pipeline_mode = #tpu.pipeline_mode<synchronous>, transform_indices = @transform_5, window_bounds = array<i64: 128, 128>}, {pipeline_mode = #tpu.pipeline_mode<synchronous>, transform_indices = @transform_6, window_bounds = array<i64: 1, 128>}, {pipeline_mode = #tpu.pipeline_mode<synchronous>, transform_indices = @transform_7, window_bounds = array<i64: 128, 128>}, {pipeline_mode = #tpu.pipeline_mode<synchronous>, transform_indices = @transform_8, window_bounds = array<i64: 1, 128>}, {transform_indices = @transform_9, window_bounds = array<i64: 32, 128>}]} {
    %c0 = arith.constant 0 : index
    %c0_0 = arith.constant 0 : index
    %0 = vector.load %arg1[%c0, %c0_0] : memref<32x128xf32, #tpu.memory_space<vmem>>, vector<32x128xf32>
    %c0_1 = arith.constant 0 : index
    %c0_2 = arith.constant 0 : index
    %1 = vector.load %arg2[%c0_1, %c0_2] : memref<128x128xf32, #tpu.memory_space<vmem>>, vector<128x128xf32>
    %cst = arith.constant dense<0.000000e+00> : vector<32x128xf32>
    %2 = tpu.matmul %0, %1, %cst {dimension_numbers = #tpu.dot_dimension_numbers<[1], [0], [0], [1], [0, 0, 1, 1], [], []>} : vector<32x128xf32>, vector<128x128xf32>, vector<32x128xf32> -> vector<32x128xf32>
    %c0_3 = arith.constant 0 : index
    %c0_4 = arith.constant 0 : index
    %3 = vector.load %arg3[%c0_3, %c0_4] : memref<1x128xf32, #tpu.memory_space<vmem>>, vector<1x128xf32>
    %4 = vector.broadcast %3 : vector<1x128xf32> to vector<32x128xf32>
    %5 = arith.addf %2, %4 : vector<32x128xf32>
    %cst_5 = arith.constant 0.000000e+00 : f32
    %6 = vector.broadcast %cst_5 : f32 to vector<32x128xf32>
    %7 = arith.maximumf %5, %6 : vector<32x128xf32>
    %c0_6 = arith.constant 0 : index
    %c0_7 = arith.constant 0 : index
    %8 = vector.load %arg4[%c0_6, %c0_7] : memref<128x128xf32, #tpu.memory_space<vmem>>, vector<128x128xf32>
    %cst_8 = arith.constant dense<0.000000e+00> : vector<32x128xf32>
    %9 = tpu.matmul %7, %8, %cst_8 {dimension_numbers = #tpu.dot_dimension_numbers<[1], [0], [0], [1], [0, 0, 1, 1], [], []>} : vector<32x128xf32>, vector<128x128xf32>, vector<32x128xf32> -> vector<32x128xf32>
    %c0_9 = arith.constant 0 : index
    %c0_10 = arith.constant 0 : index
    %10 = vector.load %arg5[%c0_9, %c0_10] : memref<1x128xf32, #tpu.memory_space<vmem>>, vector<1x128xf32>
    %11 = vector.broadcast %10 : vector<1x128xf32> to vector<32x128xf32>
    %12 = arith.addf %9, %11 : vector<32x128xf32>
    %cst_11 = arith.constant 0.000000e+00 : f32
    %13 = vector.broadcast %cst_11 : f32 to vector<32x128xf32>
    %14 = arith.maximumf %12, %13 : vector<32x128xf32>
    %c0_12 = arith.constant 0 : index
    %c0_13 = arith.constant 0 : index
    %15 = vector.load %arg6[%c0_12, %c0_13] : memref<128x128xf32, #tpu.memory_space<vmem>>, vector<128x128xf32>
    %cst_14 = arith.constant dense<0.000000e+00> : vector<32x128xf32>
    %16 = tpu.matmul %14, %15, %cst_14 {dimension_numbers = #tpu.dot_dimension_numbers<[1], [0], [0], [1], [0, 0, 1, 1], [], []>} : vector<32x128xf32>, vector<128x128xf32>, vector<32x128xf32> -> vector<32x128xf32>
    %c0_15 = arith.constant 0 : index
    %c0_16 = arith.constant 0 : index
    %17 = vector.load %arg7[%c0_15, %c0_16] : memref<1x128xf32, #tpu.memory_space<vmem>>, vector<1x128xf32>
    %18 = vector.broadcast %17 : vector<1x128xf32> to vector<32x128xf32>
    %19 = arith.addf %16, %18 : vector<32x128xf32>
    %cst_17 = arith.constant 0.000000e+00 : f32
    %20 = vector.broadcast %cst_17 : f32 to vector<32x128xf32>
    %21 = arith.maximumf %19, %20 : vector<32x128xf32>
    %c0_18 = arith.constant 0 : index
    %c0_19 = arith.constant 0 : index
    %22 = vector.load %arg8[%c0_18, %c0_19] : memref<128x128xf32, #tpu.memory_space<vmem>>, vector<128x128xf32>
    %cst_20 = arith.constant dense<0.000000e+00> : vector<32x128xf32>
    %23 = tpu.matmul %21, %22, %cst_20 {dimension_numbers = #tpu.dot_dimension_numbers<[1], [0], [0], [1], [0, 0, 1, 1], [], []>} : vector<32x128xf32>, vector<128x128xf32>, vector<32x128xf32> -> vector<32x128xf32>
    %c0_21 = arith.constant 0 : index
    %c0_22 = arith.constant 0 : index
    %24 = vector.load %arg9[%c0_21, %c0_22] : memref<1x128xf32, #tpu.memory_space<vmem>>, vector<1x128xf32>
    %25 = vector.broadcast %24 : vector<1x128xf32> to vector<32x128xf32>
    %26 = arith.addf %23, %25 : vector<32x128xf32>
    %c0_23 = arith.constant 0 : index
    %c0_24 = arith.constant 0 : index
    %27 = vector.load %arg10[%c0_23, %c0_24] : memref<32x128xf32, #tpu.memory_space<vmem>>, vector<32x128xf32>
    tpu.vector_store %arg10[%c0_23, %c0_24], %26 {strides = array<i32>} : memref<32x128xf32, #tpu.memory_space<vmem>>, vector<32x128xf32>,
    return
  }
  func.func @transform_0(%arg0: i32) -> (i32, i32) {
    %c0_i32 = arith.constant 0 : i32
    %c0_i32_0 = arith.constant 0 : i32
    return %arg0, %c0_i32 : i32, i32
  }
  func.func @transform_1(%arg0: i32) -> (i32, i32) {
    %c0_i32 = arith.constant 0 : i32
    %c0_i32_0 = arith.constant 0 : i32
    %c0_i32_1 = arith.constant 0 : i32
    return %c0_i32, %c0_i32_0 : i32, i32
  }
  func.func @transform_2(%arg0: i32) -> (i32, i32) {
    %c0_i32 = arith.constant 0 : i32
    %c0_i32_0 = arith.constant 0 : i32
    %c0_i32_1 = arith.constant 0 : i32
    return %c0_i32, %c0_i32_0 : i32, i32
  }
  func.func @transform_3(%arg0: i32) -> (i32, i32) {
    %c0_i32 = arith.constant 0 : i32
    %c0_i32_0 = arith.constant 0 : i32
    %c0_i32_1 = arith.constant 0 : i32
    return %c0_i32, %c0_i32_0 : i32, i32
  }
  func.func @transform_4(%arg0: i32) -> (i32, i32) {
    %c0_i32 = arith.constant 0 : i32
    %c0_i32_0 = arith.constant 0 : i32
    %c0_i32_1 = arith.constant 0 : i32
    return %c0_i32, %c0_i32_0 : i32, i32
  }
  func.func @transform_5(%arg0: i32) -> (i32, i32) {
    %c0_i32 = arith.constant 0 : i32
    %c0_i32_0 = arith.constant 0 : i32
    %c0_i32_1 = arith.constant 0 : i32
    return %c0_i32, %c0_i32_0 : i32, i32
  }
  func.func @transform_6(%arg0: i32) -> (i32, i32) {
    %c0_i32 = arith.constant 0 : i32
    %c0_i32_0 = arith.constant 0 : i32
    %c0_i32_1 = arith.constant 0 : i32
    return %c0_i32, %c0_i32_0 : i32, i32
  }
  func.func @transform_7(%arg0: i32) -> (i32, i32) {
    %c0_i32 = arith.constant 0 : i32
    %c0_i32_0 = arith.constant 0 : i32
    %c0_i32_1 = arith.constant 0 : i32
    return %c0_i32, %c0_i32_0 : i32, i32
  }
  func.func @transform_8(%arg0: i32) -> (i32, i32) {
    %c0_i32 = arith.constant 0 : i32
    %c0_i32_0 = arith.constant 0 : i32
    %c0_i32_1 = arith.constant 0 : i32
    return %c0_i32, %c0_i32_0 : i32, i32
  }
  func.func @transform_9(%arg0: i32) -> (i32, i32) {
    %c0_i32 = arith.constant 0 : i32
    %c0_i32_0 = arith.constant 0 : i32
    return %arg0, %c0_i32 : i32, i32
  }
}

</mosaic_0001>

<bundles_post_ra>
// kernel: deep_cfr_forward.1
= control target key start
LH: loop header
LB: loop body
LE: loop exit
PB: predicated region body
PF: predicated region fallthrough
CT: control target
= control target key end

     0   :  { %14 = vsyncpa [#allocation3], 0  ;;  %s1699_s0 = inlined_call_operand.vmem [shape: f32[64,128], index: 0, kind: input, shape index: {}]   ;;  %s1700_s1 = inlined_call_operand.vmem [shape: f32[128,128], index: 1, kind: input, shape index: {}]   ;;  %s1701_s2 = inlined_call_operand.vmem [shape: f32[1,128], index: 2, kind: input, shape index: {}]   ;;  %s1702_s3 = inlined_call_operand.hbm [shape: f32[128,128], index: 3, kind: input, shape index: {}]   ;;  %s1703_s4 = inlined_call_operand.vmem [shape: f32[1,128], index: 4, kind: input, shape index: {}]   ;;  %s1704_s5 = inlined_call_operand.hbm [shape: f32[128,128], index: 5, kind: input, shape index: {}]   ;;  %s1705_s6 = inlined_call_operand.vmem [shape: f32[1,128], index: 6, kind: input, shape index: {}]   ;;  %s1706_s7 = inlined_call_operand.hbm [shape: f32[128,128], index: 7, kind: input, shape index: {}]   ;;  %s1707_s8 = inlined_call_operand.vmem [shape: f32[1,128], index: 8, kind: input, shape index: {}]   ;;  %s1708_s9 = inlined_call_operand.vmem [shape: f32[64,128], index: 9, kind: output, shape index: {}]  }
   0x1   :  { %15 = vsyncpa [#allocation5], 0  ;;  %s1496_s30 = smov 0  }
   0x2 LB: > { %s919_s10 = sadd.s32 4294967295, %s1439_s30   ;;  %p921_p0 = scmp.ge.s32.totalorder %s1439_s30, 1  ;;  %s1439_s30 = sphi %s1496_s30, %s21_s30  }
   0x3   : > { %p246_p1 = scmp.lt.s32.totalorder %s1439_s30, 3  ;;  %p1506_p2 = scmp.eq.s32.totalorder %s919_s10, 0 }
   0x4   : > { %s1441_s13 = smov [#allocation4]   ;;  %s1442_s15 = smov [#allocation2]  }
   0x5   : > { %s1712_s11 = scalar_select %p1506_p2, 1, 0 }
   0x6   : > { %p1510_p3 = pnand %p921_p0, %p246_p1  ;;  %s280_s14 = sshll.u32 %s1441_s13, 4  ;;  %s281_s14 = int_to_ptr.vmem [resolvable:$true] %s280_s14 }
   0x7   : > { %s264_s16 = sshll.u32 %s1442_s15, 4  ;;  %s1443_s18 = smov [#allocation6]   ;;  %s1522_s16 = int_to_ptr.vmem [resolvable:$true] %s264_s16 }
   0x8   : > { %s1713_s12 = scalar_select %p1510_p3, 1, 0 }
   0x9   : > { %p1312_p4 = pneg %p1510_p3  ;;  %s296_s19 = sshll.u32 %s1443_s18, 4  ;;  %s1524_s19 = int_to_ptr.vmem [resolvable:$true] %s296_s19 }
   0xa   : > { %s1341_s22 = scalar_lea.hbm %s1704_s5, 2048 }
   0xb   : > { %p1518_p5 = pnand %p1506_p2, %p1312_p4  ;;  %p1342_p6 = scmp.ne.s32.totalorder %s1704_s5, %s1341_s22 }
   0xc   : > { %p1348_p10 = scmp.lt.u32.totalorder %s1341_s22, %s1704_s5 }
   0xd   : > { %p1534_p7 = pneg %p1518_p5 }
   0xf   : > { %p1344_p8 = pnand %p1534_p7, %p1342_p6 }
  0x11   : > { %p1345_p9 = pneg %p1344_p8 }
  0x13   : > { %p1350_p11 = pnand %p1348_p10, %p1345_p9 }
  0x15   : > { %1353 = shalt.err (!%p1350_p11)
}
  0x16   : > { %s1354_s28 = scalar_lea.vmem %s281_s14, 2048  ;;  %p1362_p1 = scmp.lt.s32.totalorder %s281_s14, %s281_s14 }
  0x17   : > { %p1355_p12 = scmp.ne.s32.totalorder %s281_s14, %s1354_s28  ;;  %p1363_p4 = scmp.lt.s32.totalorder %s1354_s28, %s1354_s28 }
  0x19   : > { %p1357_p13 = pnand %p1355_p12, %p1534_p7  ;;  %p1364_p2 = por %p1363_p4, %p1362_p1 }
  0x1b   : > { %p1358_p0 = pneg %p1357_p13 }
  0x1d   : > { %p1365_p3 = pnand %p1364_p2, %p1358_p0 }
  0x1f   : > { %1368 = shalt.err (!%p1365_p3)
}
  0x20   : > { %s1444_s29 = smov 128   ;;  %s1445_s13 = smov 8  }
  0x21   : > { %1318 = dma.hbm_to_vmem [thread:$0]  (!%p1518_p5), %s1704_s5, 2048, %s281_s14, [#allocation5], %s1444_s29, %s1444_s29, %s1445_s13  }
  0x22   : > { %s1369_s22 = scalar_lea.hbm %s1702_s3, 2048 }
  0x23   : > { %p1370_p2 = scmp.ne.s32.totalorder %s1702_s3, %s1369_s22  ;;  %p1376_p8 = scmp.lt.u32.totalorder %s1369_s22, %s1702_s3 }
  0x25   : > { %p1372_p3 = pnand %p1370_p2, %p1534_p7 }
  0x27   : > { %p1373_p6 = pneg %p1372_p3 }
  0x29   : > { %p1378_p9 = pnand %p1376_p8, %p1373_p6 }
  0x2b   : > { %1381 = shalt.err (!%p1378_p9)
}
  0x2c   : > { %s1382_s14 = scalar_lea.vmem %s1522_s16, 2048  ;;  %p1390_p13 = scmp.lt.s32.totalorder %s1522_s16, %s1522_s16 }
  0x2d   : > { %p1383_p10 = scmp.ne.s32.totalorder %s1522_s16, %s1382_s14  ;;  %p1391_p0 = scmp.lt.s32.totalorder %s1382_s14, %s1382_s14 }
  0x2f   : > { %p1385_p11 = pnand %p1383_p10, %p1534_p7  ;;  %p1392_p1 = por %p1391_p0, %p1390_p13 }
  0x31   : > { %p1386_p12 = pneg %p1385_p11 }
  0x33   : > { %p1393_p4 = pnand %p1392_p1, %p1386_p12 }
  0x35   : > { %1396 = shalt.err (!%p1393_p4)
}
  0x36   : > { %1315 = dma.hbm_to_vmem [thread:$0]  (!%p1518_p5), %s1702_s3, 2048, %s1522_s16, [#allocation3], %s1444_s29, %s1444_s29, %s1445_s13  }
  0x37   : > { %s1397_s21 = scalar_lea.hbm %s1706_s7, 2048 }
  0x38   : > { %p1398_p2 = scmp.ne.s32.totalorder %s1706_s7, %s1397_s21  ;;  %p1404_p8 = scmp.lt.u32.totalorder %s1397_s21, %s1706_s7 }
  0x3a   : > { %p1400_p3 = pnand %p1398_p2, %p1534_p7 }
  0x3c   : > { %p1401_p6 = pneg %p1400_p3 }
  0x3e   : > { %p1406_p9 = pnand %p1404_p8, %p1401_p6 }
  0x40   : > { %1409 = shalt.err (!%p1406_p9)
}
  0x41   : > { %s1410_s16 = scalar_lea.vmem %s1524_s19, 2048  ;;  %p1418_p13 = scmp.lt.s32.totalorder %s1524_s19, %s1524_s19 }
  0x42   : > { %p1411_p10 = scmp.ne.s32.totalorder %s1524_s19, %s1410_s16  ;;  %p1419_p0 = scmp.lt.s32.totalorder %s1410_s16, %s1410_s16 }
  0x44   : > { %p1413_p11 = pnand %p1411_p10, %p1534_p7  ;;  %p1420_p1 = por %p1419_p0, %p1418_p13 }
  0x46   : > { %p1414_p12 = pneg %p1413_p11 }
  0x48   : > { %p1421_p4 = pnand %p1420_p1, %p1414_p12 }
  0x4a   : > { %1424 = shalt.err (!%p1421_p4)
}
  0x4b   : > { %1321 = dma.hbm_to_vmem [thread:$0]  (!%p1518_p5), %s1706_s7, 2048, %s1524_s19, [#allocation5], %s1444_s29, %s1444_s29, %s1445_s13  }
  0x4c   : > { %p1716_p2 = scmp.ne.s32.totalorder %s1713_s12, 0 }
  0x4d   : > { %p1717_p7 = scmp.ne.s32.totalorder (!%p1716_p2), %s1712_s11, 0 }
  0x4e   : > { %324 = sbr.rel (%p1716_p2) target bundleno = 997 (0x3e5), region = 56 }
  0x55   : > { %1430 = dma.done.wait (%p1717_p7), [#allocation3], 2048  }
  0x56   : > { %1432 = vsyncadd (%p1717_p7), [#allocation3], 4294965248 }
  0x57   : > { %1434 = dma.done.wait (%p1717_p7), [#allocation5], 4096  }
  0x58   : > { %1436 = vsyncadd (%p1717_p7), [#allocation5], 4294963200  ;;  %s930_s17 = sshll.u32 %s919_s10, 2  ;;  %v384_v0 = vld [vmem:[%s1700_s1] sm:$0xff]  ;;  %v385_v1 = vld [vmem:[%s1700_s1 + $0x8] sm:$0xff] }
  0x59   : > { %p369_p3 = scmp.lt.s32.totalorder %s930_s17, 7  ;;  %v386_v2 = vld [vmem:[%s1700_s1 + $0x10] sm:$0xff]  ;;  %v1172_v3 = vpack.c.bf16 %v385_v1, %v384_v0  ;;  %v387_v4 = vld [vmem:[%s1700_s1 + $0x18] sm:$0xff]  ;;  %v388_v6 = vld [vmem:[%s1700_s1 + $0x20] sm:$0xff] }
  0x5a   : > { %v1176_v5 = vpack.c.bf16 %v387_v4, %v386_v2  ;;  %v389_v7 = vld [vmem:[%s1700_s1 + $0x28] sm:$0xff]  ;;  %v390_v10 = vld [vmem:[%s1700_s1 + $0x30] sm:$0xff]  ;;  %v391_v11 = vld [vmem:[%s1700_s1 + $0x38] sm:$0xff] }
  0x5b   : > { %s1719_s17 = smov (!%p369_p3, %s930_s17), 7  ;;  %1173 = vmatprep.subr.bf16.mxu0 %v1172_v3  ;;  %v1180_v8 = vpack.c.bf16 %v389_v7, %v388_v6  ;;  %v496_v12 = vld [vmem:[#allocation2] sm:$0xff]  ;;  %v497_v13 = vld [vmem:[#allocation2 + $0x8] sm:$0xff]  ;;  %v498_v14 = vld [vmem:[#allocation2 + $0x10] sm:$0xff]  ;;  %v1184_v18 = vpack.c.bf16 %v391_v11, %v390_v10 }
  0x5c   : > { %s931_s12 = sshll.u32 %s1719_s17, 3  ;;  %1175 = vmatpush3.bf16.msra.mxu0 %v1172_v3  ;;  %v499_v15 = vld [vmem:[#allocation2 + $0x18] sm:$0xff]  ;;  %v1204_v16 = vpack.c.bf16 %v497_v13, %v496_v12  ;;  %v500_v19 = vld [vmem:[#allocation2 + $0x20] sm:$0xff]  ;;  %v501_v20 = vld [vmem:[#allocation2 + $0x28] sm:$0xff] }
  0x5d   : > { %s1643_s26 = scalar_lea.vmem %s1699_s0, %s931_s12  ;;  %1177 = vmatprep.subr.bf16.mxu0 %v1176_v5  ;;  %v1208_v17 = vpack.c.bf16 %v499_v15, %v498_v14  ;;  %v392_v21 = vld [vmem:[%s1700_s1 + $0x40] sm:$0xff]  ;;  %v393_v22 = vld [vmem:[%s1700_s1 + $0x48] sm:$0xff]  ;;  %v1212_v23 = vpack.c.bf16 %v501_v20, %v500_v19  ;;  %v502_v25 = vld [vmem:[#allocation2 + $0x30] sm:$0xff]  ;;  %s378_s20 = scalar_lea.vmem %s1708_s9, %s931_s12 }
  0x5e   : > { %v380_v9 = vld [vmem:[%s1643_s26] sm:$0xff]  ;;  %1205 = vmatprep.subr.bf16.mxu1 %v1204_v16  ;;  %v1188_v24 = vpack.c.bf16 %v393_v22, %v392_v21  ;;  %v503_v26 = vld [vmem:[#allocation2 + $0x38] sm:$0xff]  ;;  %v394_v27 = vld [vmem:[%s1700_s1 + $0x50] sm:$0xff] }
  0x5f   : > { %1052 = vmatprep.mubr.f32.mxu0 %v380_v9  ;;  %1207 = vmatpush3.bf16.msra.mxu1 %v1204_v16  ;;  %v395_v28 = vld [vmem:[%s1700_s1 + $0x58] sm:$0xff]  ;;  %v1216_v29 = vpack.c.bf16 %v503_v26, %v502_v25  ;;  %v504_v31 = vld [vmem:[#allocation2 + $0x40] sm:$0xff]  ;;  %v505_v32 = vld [vmem:[#allocation2 + $0x48] sm:$0xff] }
  0x60   : > { %1179 = vmatpush3.bf16.msra.mxu0 %v1176_v5  ;;  %1209 = vmatprep.subr.bf16.mxu1 %v1208_v17  ;;  %v1192_v30 = vpack.c.bf16 %v395_v28, %v394_v27  ;;  %v396_v33 = vld [vmem:[%s1700_s1 + $0x60] sm:$0xff]  ;;  %v397_v34 = vld [vmem:[%s1700_s1 + $0x68] sm:$0xff]  ;;  %v1220_v35 = vpack.c.bf16 %v505_v32, %v504_v31  ;;  %v506_v37 = vld [vmem:[#allocation2 + $0x50] sm:$0xff] }
  0x61   : > { %1181 = vmatprep.subr.bf16.mxu0 %v1180_v8  ;;  %v1196_v36 = vpack.c.bf16 %v397_v34, %v396_v33  ;;  %v507_v38 = vld [vmem:[#allocation2 + $0x58] sm:$0xff]  ;;  %v398_v39 = vld [vmem:[%s1700_s1 + $0x70] sm:$0xff]  ;;  %v508_v43 = vld [vmem:[#allocation2 + $0x60] sm:$0xff] }
  0x62   : > { %v399_v40 = vld [vmem:[%s1700_s1 + $0x78] sm:$0xff]  ;;  %v1224_v41 = vpack.c.bf16 %v507_v38, %v506_v37  ;;  %v509_v44 = vld [vmem:[#allocation2 + $0x68] sm:$0xff]  ;;  %v382_v47 = vld [vmem:[%s1643_s26 + $0x10] sm:$0xff] }
  0x63   : > { %1211 = vmatpush3.bf16.msra.mxu1 %v1208_v17  ;;  %v1200_v42 = vpack.c.bf16 %v399_v40, %v398_v39  ;;  %v1228_v45 = vpack.c.bf16 %v509_v44, %v508_v43  ;;  %v381_v46 = vld [vmem:[%s1643_s26 + $0x8] sm:$0xff]  ;;  %v383_v48 = vld [vmem:[%s1643_s26 + $0x18] sm:$0xff]  ;;  %v510_v49 = vld [vmem:[#allocation2 + $0x70] sm:$0xff] }
  0x64   : > { %1183 = vmatpush3.bf16.msra.mxu0 %v1180_v8  ;;  %1213 = vmatprep.subr.bf16.mxu1 %v1212_v23  ;;  %v511_v50 = vld [vmem:[#allocation2 + $0x78] sm:$0xff]  ;;  %v608_v52 = vld [vmem:[#allocation4] sm:$0xff]  ;;  %v609_v53 = vld [vmem:[#allocation4 + $0x8] sm:$0xff] }
  0x65   : > { %1185 = vmatprep.subr.bf16.mxu0 %v1184_v18  ;;  %v1232_v51 = vpack.c.bf16 %v511_v50, %v510_v49  ;;  %v610_v54 = vld [vmem:[#allocation4 + $0x10] sm:$0xff]  ;;  %v1236_v55 = vpack.c.bf16 %v609_v53, %v608_v52  ;;  %v611_v56 = vld [vmem:[#allocation4 + $0x18] sm:$0xff]  ;;  %v612_v58 = vld [vmem:[#allocation4 + $0x20] sm:$0xff] }
  0x66   : > { %v1240_v57 = vpack.c.bf16 %v611_v56, %v610_v54  ;;  %v613_v59 = vld [vmem:[#allocation4 + $0x28] sm:$0xff]  ;;  %v614_v61 = vld [vmem:[#allocation4 + $0x30] sm:$0xff]  ;;  %v615_v62 = vld [vmem:[#allocation4 + $0x38] sm:$0xff] }
  0x67   : > { %1215 = vmatpush3.bf16.msra.mxu1 %v1212_v23  ;;  %v1244_v60 = vpack.c.bf16 %v613_v59, %v612_v58  ;;  %v1248_v63 = vpack.c.bf16 %v615_v62, %v614_v61  ;;  %v616_v0 = vld [vmem:[#allocation4 + $0x40] sm:$0xff]  ;;  %v617_v1 = vld [vmem:[#allocation4 + $0x48] sm:$0xff]  ;;  %v618_v3 = vld [vmem:[#allocation4 + $0x50] sm:$0xff] }
  0x68   : > { %1187 = vmatpush3.bf16.msra.mxu0 %v1184_v18  ;;  %1217 = vmatprep.subr.bf16.mxu1 %v1216_v29  ;;  %v1252_v2 = vpack.c.bf16 %v617_v1, %v616_v0  ;;  %v619_v4 = vld [vmem:[#allocation4 + $0x58] sm:$0xff]  ;;  %v620_v6 = vld [vmem:[#allocation4 + $0x60] sm:$0xff]  ;;  %v621_v7 = vld [vmem:[#allocation4 + $0x68] sm:$0xff] }
  0x69   : > { %1189 = vmatprep.subr.bf16.mxu0 %v1188_v24  ;;  %v1256_v5 = vpack.c.bf16 %v619_v4, %v618_v3  ;;  %v1260_v8 = vpack.c.bf16 %v621_v7, %v620_v6  ;;  %v934_v9 = vld [vmem:[%s1701_s2] ss:$0 sm:$0xff]  ;;  %v622_v22 = vld [vmem:[#allocation4 + $0x70] sm:$0xff]  ;;  %v623_v23 = vld [vmem:[#allocation4 + $0x78] sm:$0xff] }
  0x6a   : > { %v720_v25 = vld [vmem:[#allocation6] sm:$0xff]  ;;  %v721_v26 = vld [vmem:[#allocation6 + $0x8] sm:$0xff]  ;;  %v722_v27 = vld [vmem:[#allocation6 + $0x10] sm:$0xff] }
  0x6b   : > { %1219 = vmatpush3.bf16.msra.mxu1 %v1216_v29  ;;  %v1268_v28 = vpack.c.bf16 %v721_v26, %v720_v25  ;;  %v723_v29 = vld [vmem:[#allocation6 + $0x18] sm:$0xff]  ;;  %v724_v31 = vld [vmem:[#allocation6 + $0x20] sm:$0xff]  ;;  %v725_v32 = vld [vmem:[#allocation6 + $0x28] sm:$0xff] }
  0x6c   : > { %1191 = vmatpush3.bf16.msra.mxu0 %v1188_v24  ;;  %1221 = vmatprep.subr.bf16.mxu1 %v1220_v35  ;;  %v1264_v24 = vpack.c.bf16 %v623_v23, %v622_v22  ;;  %v1276_v33 = vpack.c.bf16 %v725_v32, %v724_v31  ;;  %v726_v34 = vld [vmem:[#allocation6 + $0x30] sm:$0xff]  ;;  %v728_v37 = vld [vmem:[#allocation6 + $0x40] sm:$0xff]  ;;  %v729_v38 = vld [vmem:[#allocation6 + $0x48] sm:$0xff] }
  0x6d   : > { %1193 = vmatprep.subr.bf16.mxu0 %v1192_v30  ;;  %v1284_v39 = vpack.c.bf16 %v729_v38, %v728_v37  ;;  %v730_v40 = vld [vmem:[#allocation6 + $0x50] sm:$0xff]  ;;  %v732_v43 = vld [vmem:[#allocation6 + $0x60] sm:$0xff]  ;;  %v733_v44 = vld [vmem:[#allocation6 + $0x68] sm:$0xff] }
  0x6e   : > { %v734_v59 = vld [vmem:[#allocation6 + $0x70] sm:$0xff]  ;;  %v936_v62 = vld [vmem:[%s1705_s6] ss:$0 sm:$0xff] }
  0x6f   : > { %1223 = vmatpush3.bf16.msra.mxu1 %v1220_v35  ;;  %v727_v35 = vld [vmem:[#allocation6 + $0x38] sm:$0xff] }
  0x70   : > { %1195 = vmatpush3.bf16.msra.mxu0 %v1192_v30  ;;  %1225 = vmatprep.subr.bf16.mxu1 %v1224_v41  ;;  %v1272_v30 = vpack.c.bf16 %v723_v29, %v722_v27 }
  0x71   : > { %1197 = vmatprep.subr.bf16.mxu0 %v1196_v36 }
  0x73   : > { %1227 = vmatpush3.bf16.msra.mxu1 %v1224_v41  ;;  %v731_v41 = vld [vmem:[#allocation6 + $0x58] sm:$0xff] }
  0x74   : > { %1199 = vmatpush3.bf16.msra.mxu0 %v1196_v36  ;;  %1229 = vmatprep.subr.bf16.mxu1 %v1228_v45  ;;  %v1280_v36 = vpack.c.bf16 %v727_v35, %v726_v34 }
  0x75   : > { %1201 = vmatprep.subr.bf16.mxu0 %v1200_v42 }
  0x77   : > { %1231 = vmatpush3.bf16.msra.mxu1 %v1228_v45  ;;  %v1292_v45 = vpack.c.bf16 %v733_v44, %v732_v43 }
  0x78   : > { %1203 = vmatpush3.bf16.msra.mxu0 %v1200_v42  ;;  %1233 = vmatprep.subr.bf16.mxu1 %v1232_v51  ;;  %v1288_v42 = vpack.c.bf16 %v731_v41, %v730_v40 }
  0x79   : > { %1237 = vmatprep.subr.bf16.mxu0 %v1236_v55 }
  0x7b   : > { %1053 = vmatmul.mubr.f32.vlgmr.msra.gmra.mrb[0].mxu0 %v381_v46  ;;  %1235 = vmatpush3.bf16.msra.mxu1 %v1232_v51  ;;  %v935_v46 = vld [vmem:[%s1703_s4] ss:$0 sm:$0xff] }
  0x7c   : > { %1055 = vmatprep.mubr.f32.mxu0 %v382_v47  ;;  %1239 = vmatpush3.bf16.msra.mxu0 %v1236_v55 }
  0x7d   : > { %1241 = vmatprep.subr.bf16.mxu0 %v1240_v57  ;;  %1269 = vmatprep.subr.bf16.mxu1 %v1268_v28 }
  0x7f   : > { %1056 = vmatmul.mubr.f32.gmra.mrb[2].mxu0 %v383_v48 }
  0x80   : > { %1243 = vmatpush3.bf16.msra.mxu0 %v1240_v57 }
  0x81   : > { %1245 = vmatprep.subr.bf16.mxu0 %v1244_v60 }
  0x84   : > { %1247 = vmatpush3.bf16.msra.mxu0 %v1244_v60  ;;  %v735_v60 = vld [vmem:[#allocation6 + $0x78] sm:$0xff] }
  0x85   : > { %1249 = vmatprep.subr.bf16.mxu0 %v1248_v63  ;;  %v1296_v61 = vpack.c.bf16 %v735_v60, %v734_v59 }
  0x88   : > { %1251 = vmatpush3.bf16.msra.mxu0 %v1248_v63 }
  0x89   : > { %1253 = vmatprep.subr.bf16.mxu0 %v1252_v2 }
  0x8c   : > { %1255 = vmatpush3.bf16.msra.mxu0 %v1252_v2 }
  0x8d   : > { %1257 = vmatprep.subr.bf16.mxu0 %v1256_v5 }
  0x90   : > { %1259 = vmatpush3.bf16.msra.mxu0 %v1256_v5 }
  0x91   : > { %1261 = vmatprep.subr.bf16.mxu0 %v1260_v8 }
  0x94   : > { %1263 = vmatpush3.bf16.msra.mxu0 %v1260_v8 }
  0x95   : > { %1265 = vmatprep.subr.bf16.mxu0 %v1264_v24 }
  0x98   : > { %1267 = vmatpush3.bf16.msra.mxu0 %v1264_v24 }
 0x14e   : > { %v1054_v10 = vpop.f32.mrb[0].mxu0 }
 0x14f   : > { %v479_v11 = vadd.f32 %v1054_v10, %v934_v9  ;;  %v473_v12 = vpop.f32.mrb[1].mxu0 }
 0x150   : > { %v474_v13 = vadd.f32 %v934_v9, %v473_v12 }
 0x151   : > { %v493_v16 = vmax.f32 %v479_v11, 0.0  ;;  %v937_v11 = vld [vmem:[%s1707_s8] ss:$0 sm:$0xff] }
 0x152   : > { %v1057_v14 = vpop.f32.mrb[2].mxu0  ;;  %v492_v15 = vmax.f32 %v474_v13, 0.0 }
 0x153   : > { %v489_v17 = vadd.f32 %v1057_v14, %v934_v9  ;;  %v483_v18 = vpop.f32.mrb[3].mxu0 }
 0x154   : > { %v484_v19 = vadd.f32 %v934_v9, %v483_v18  ;;  %1090 = vmatprep.mubr.f32.mxu1 %v492_v15 }
 0x155   : > { %1091 = vmatmul.mubr.f32.vlgmr.msra.gmra.mrb[0].mxu1 %v493_v16  ;;  %v495_v21 = vmax.f32 %v489_v17, 0.0 }
 0x156   : > { %v494_v20 = vmax.f32 %v484_v19, 0.0  ;;  %1271 = vmatpush3.bf16.msra.mxu1 %v1268_v28 }
 0x157   : > { %1273 = vmatprep.subr.bf16.mxu1 %v1272_v30 }
 0x158   : > { %1093 = vmatprep.mubr.f32.mxu1 %v494_v20 }
 0x159   : > { %1094 = vmatmul.mubr.f32.gmra.mrb[2].mxu1 %v495_v21 }
 0x15a   : > { %1275 = vmatpush3.bf16.msra.mxu1 %v1272_v30 }
 0x15b   : > { %1277 = vmatprep.subr.bf16.mxu1 %v1276_v33 }
 0x15e   : > { %1279 = vmatpush3.bf16.msra.mxu1 %v1276_v33 }
 0x15f   : > { %1281 = vmatprep.subr.bf16.mxu1 %v1280_v36 }
 0x162   : > { %1283 = vmatpush3.bf16.msra.mxu1 %v1280_v36 }
 0x163   : > { %1285 = vmatprep.subr.bf16.mxu1 %v1284_v39 }
 0x166   : > { %1287 = vmatpush3.bf16.msra.mxu1 %v1284_v39 }
 0x167   : > { %1289 = vmatprep.subr.bf16.mxu1 %v1288_v42 }
 0x16a   : > { %1291 = vmatpush3.bf16.msra.mxu1 %v1288_v42 }
 0x16b   : > { %1293 = vmatprep.subr.bf16.mxu1 %v1292_v45 }
 0x16e   : > { %1295 = vmatpush3.bf16.msra.mxu1 %v1292_v45 }
 0x16f   : > { %1297 = vmatprep.subr.bf16.mxu1 %v1296_v61 }
 0x172   : > { %1299 = vmatpush3.bf16.msra.mxu1 %v1296_v61 }
 0x228   : > { %v1092_v47 = vpop.f32.mrb[0].mxu1 }
 0x229   : > { %v591_v48 = vadd.f32 %v1092_v47, %v935_v46  ;;  %v585_v49 = vpop.f32.mrb[1].mxu1 }
 0x22a   : > { %v586_v50 = vadd.f32 %v935_v46, %v585_v49 }
 0x22b   : > { %v605_v53 = vmax.f32 %v591_v48, 0.0 }
 0x22c   : > { %v604_v51 = vmax.f32 %v586_v50, 0.0  ;;  %v1095_v52 = vpop.f32.mrb[2].mxu1 }
 0x22d   : > { %v601_v54 = vadd.f32 %v1095_v52, %v935_v46  ;;  %v595_v55 = vpop.f32.mrb[3].mxu1 }
 0x22e   : > { %v596_v56 = vadd.f32 %v935_v46, %v595_v55  ;;  %1128 = vmatprep.mubr.f32.mxu0 %v604_v51 }
 0x22f   : > { %1129 = vmatmul.mubr.f32.vlgmr.msra.gmra.mrb[4].mxu0 %v605_v53  ;;  %v607_v58 = vmax.f32 %v601_v54, 0.0 }
 0x230   : > { %v606_v57 = vmax.f32 %v596_v56, 0.0 }
 0x232   : > { %1131 = vmatprep.mubr.f32.mxu0 %v606_v57 }
 0x233   : > { %1132 = vmatmul.mubr.f32.gmra.mrb[6].mxu0 %v607_v58 }
 0x302   : > { %v1130_v63 = vpop.f32.mrb[4].mxu0 }
 0x303   : > { %v703_v0 = vadd.f32 %v1130_v63, %v936_v62  ;;  %v697_v1 = vpop.f32.mrb[5].mxu0 }
 0x304   : > { %v698_v2 = vadd.f32 %v936_v62, %v697_v1 }
 0x305   : > { %v717_v5 = vmax.f32 %v703_v0, 0.0 }
 0x306   : > { %v716_v3 = vmax.f32 %v698_v2, 0.0  ;;  %v1133_v4 = vpop.f32.mrb[6].mxu0 }
 0x307   : > { %v713_v6 = vadd.f32 %v1133_v4, %v936_v62  ;;  %v707_v7 = vpop.f32.mrb[7].mxu0 }
 0x308   : > { %v708_v8 = vadd.f32 %v936_v62, %v707_v7  ;;  %1166 = vmatprep.mubr.f32.mxu1 %v716_v3 }
 0x309   : > { %1167 = vmatmul.mubr.f32.vlgmr.msra.gmra.mrb[4].mxu1 %v717_v5  ;;  %v719_v10 = vmax.f32 %v713_v6, 0.0 }
 0x30a   : > { %v718_v9 = vmax.f32 %v708_v8, 0.0 }
 0x30c   : > { %1169 = vmatprep.mubr.f32.mxu1 %v718_v9 }
 0x30d   : > { %1170 = vmatmul.mubr.f32.gmra.mrb[6].mxu1 %v719_v10 }
 0x3dc   : > { %v1168_v12 = vpop.f32.mrb[4].mxu1 }
 0x3dd   : > { %v809_v13 = vpop.f32.mrb[5].mxu1  ;;  %v815_v15 = vadd.f32 %v1168_v12, %v937_v11 }
 0x3de   : > { %v810_v14 = vadd.f32 %v937_v11, %v809_v13 }
 0x3df   : > { %829 = vst [vmem:[%s378_s20 + $0x8] sm:$0xff] %v815_v15 }
 0x3e0   : > { %828 = vst [vmem:[%s378_s20] sm:$0xff] %v810_v14  ;;  %v1171_v16 = vpop.f32.mrb[6].mxu1 }
 0x3e1   : > { %v819_v17 = vpop.f32.mrb[7].mxu1  ;;  %v825_v19 = vadd.f32 %v1171_v16, %v937_v11 }
 0x3e2   : > { %v820_v18 = vadd.f32 %v937_v11, %v819_v17 }
 0x3e3   : > { %831 = vst [vmem:[%s378_s20 + $0x18] sm:$0xff] %v825_v19 }
 0x3e4   : > { %830 = vst [vmem:[%s378_s20 + $0x10] sm:$0xff] %v820_v18 }
 0x3e5 PF: > { %s21_s30 = sadd.s32 1, %s1439_s30  }
 0x3e6   : > { %p18_p5 = scmp.ge.s32.totalorder %s21_s30, 4  }
 0x3e8   :  { %20 = sbr.rel (!%p18_p5) target bundleno = 2 (0x2), region = 99 }
 0x3ef   :  { %854 = vsyncpa [#allocation3], 1 }
 0x3f0   :  { %856 = vsyncpa [#allocation3 + $0x1], 1 }
 0x3f1   :  { %857 = vsyncpa [#allocation5], 1 }

</bundles_post_ra>
